<compile_context>
chip_gen: v5e
topology: v5e:2x2
jax: 0.10.0
libtpu: 0.0.40
codegen_flags: <defaults>
</compile_context>

<pallas_src>
import functools

import jax
import jax.numpy as jnp
from jax.experimental import pallas as pl
from jax.experimental.pallas import tpu as pltpu


# ---------------------------------------------------------------------------
# Kernels
# ---------------------------------------------------------------------------
def _rmsnorm_gated_kernel(x_ref, z_ref, w_ref, o_ref, *, eps):
    x = x_ref[...].astype(jnp.float32)
    z = z_ref[...].astype(jnp.float32)
    w = w_ref[...].astype(jnp.float32)            # (1, d) -> broadcasts over rows
    x = x * (z * jax.nn.sigmoid(z))               # gate: x * silu(z)
    ms = jnp.mean(x * x, axis=-1, keepdims=True)  # per-row mean square (lane reduce)
    inv = jax.lax.rsqrt(ms + eps)
    o_ref[...] = (x * inv * w).astype(o_ref.dtype)


def _rmsnorm_kernel(x_ref, w_ref, o_ref, *, eps):
    x = x_ref[...].astype(jnp.float32)
    w = w_ref[...].astype(jnp.float32)            # (1, d)
    ms = jnp.mean(x * x, axis=-1, keepdims=True)
    inv = jax.lax.rsqrt(ms + eps)
    o_ref[...] = (x * inv * w).astype(o_ref.dtype)


# ---------------------------------------------------------------------------
# Tiling / VMEM heuristics
# ---------------------------------------------------------------------------
def _round_up(x, m):
    return ((x + m - 1) // m) * m


def _vmem_capacity_bytes():
    """Per-core VMEM capacity; conservative fallback if the query is unavailable."""
    try:
        return int(pltpu.get_tpu_info().vmem_capacity_bytes)
    except Exception:
        return 64 * 1024 * 1024  # v7x per-TensorCore size (smallest generation)


def _choose_block_rows(rows, d, itemsize, gated, vmem_budget):
    """Pick a row-tile size: big enough to amortize per-step overhead, small
    enough that double-buffered streams fit in the VMEM budget, and (when
    possible) leaving >= 2 grid steps so both v7x TensorCores get work."""
    # Sublane packing: 8 rows for 32-bit dtypes, 16 for 16-bit, 32 for 8-bit.
    mult = {4: 8, 2: 16, 1: 32}.get(itemsize, 8)
    n_streams = 3 if gated else 2                 # double-buffered: x[, z], out
    per_row_vmem = n_streams * 2 * d * itemsize
    max_by_vmem = max(vmem_budget // max(per_row_vmem, 1), mult)

    target = min(max_by_vmem, 1024, _round_up(rows, mult))
    if rows >= 2 * mult:
        # Keep the parallel grid at least 2 long (megacore sharding on v7x).
        target = min(target, _round_up(pl.cdiv(rows, 2), mult))
    target = max((target // mult) * mult, mult)
    if target >= rows:
        # One block covering all rows: use the exact full extent (always legal).
        return int(rows)
    return int(target)


# ---------------------------------------------------------------------------
# Public wrapper
# ---------------------------------------------------------------------------
def rmsnorm(x, weight, z=None, *, eps=1e-5, block_rows=None):
    """Gated RMSNorm. x: (..., d); z: same shape as x or None; weight: (d,)."""
    orig_shape = x.shape
    d = orig_shape[-1]
    x2 = x.reshape(-1, d)
    rows = x2.shape[0]
    w2 = weight.reshape(1, d)
    gated = z is not None

    vmem_cap = _vmem_capacity_bytes()
    # Per-generation tile budget: ~half of VMEM, capped at 48 MiB (v7x-safe).
    vmem_budget = min(vmem_cap // 2, 48 << 20)
    if block_rows is None:
        block_rows = _choose_block_rows(rows, d, x2.dtype.itemsize, gated, vmem_budget)

    grid = (pl.cdiv(rows, block_rows),)           # ragged last block handled by Pallas
    row_spec = pl.BlockSpec((block_rows, d), lambda i: (i, 0))
    w_spec = pl.BlockSpec((1, d), lambda i: (0, 0))
    out_shape = jax.ShapeDtypeStruct((rows, d), x.dtype)

    # Scoped-VMEM limit sized for the chosen tiles (with headroom for f32 temps).
    n_streams = 3 if gated else 2
    needed = n_streams * 2 * block_rows * d * x2.dtype.itemsize + 2 * d * w2.dtype.itemsize
    vmem_limit = int(min(max(2 * needed + (4 << 20), 32 << 20), vmem_cap))
    cp = pltpu.CompilerParams(
        dimension_semantics=("parallel",),
        vmem_limit_bytes=vmem_limit,
    )

    # Advisory cost estimate for XLA's scheduler (this op is pure HBM streaming).
    n_in = 2 if gated else 1
    bytes_accessed = (
        n_in * rows * d * x2.dtype.itemsize      # x (and z) reads
        + rows * d * x2.dtype.itemsize           # output write
        + d * w2.dtype.itemsize                  # weight read
    )
    cost = pl.CostEstimate(
        flops=int(rows * d * (7 if gated else 5)),
        transcendentals=int(rows * d if gated else 0) + int(rows),
        bytes_accessed=int(bytes_accessed),
    )

    if gated:
        z2 = z.reshape(-1, d)
        out = pl.pallas_call(
            functools.partial(_rmsnorm_gated_kernel, eps=eps),
            out_shape=out_shape,
            grid_spec=pltpu.PrefetchScalarGridSpec(
                num_scalar_prefetch=0,
                grid=grid,
                in_specs=[row_spec, row_spec, w_spec],
                out_specs=row_spec,
            ),
            compiler_params=cp,
            cost_estimate=cost,
        )(x2, z2, w2)
    else:
        out = pl.pallas_call(
            functools.partial(_rmsnorm_kernel, eps=eps),
            out_shape=out_shape,
            grid_spec=pltpu.PrefetchScalarGridSpec(
                num_scalar_prefetch=0,
                grid=grid,
                in_specs=[row_spec, w_spec],
                out_specs=row_spec,
            ),
            compiler_params=cp,
            cost_estimate=cost,
        )(x2, w2)

    return out.reshape(orig_shape)


# ---------------------------------------------------------------------------
# Pure-JAX reference
# ---------------------------------------------------------------------------
def _reference(x, weight, z=None, eps=1e-5):
    x = x.astype(jnp.float32)
    if z is not None:
        z = z.astype(jnp.float32)
        x = x * (z * jax.nn.sigmoid(z))
    w = weight.astype(jnp.float32)
    return x * jax.lax.rsqrt(jnp.mean(x * x, axis=-1, keepdims=True) + eps) * w


if __name__ == "__main__":
    key = jax.random.PRNGKey(0)
    k1, k2, k3, k4 = jax.random.split(key, 4)

    # Small shapes consistent with the module.
    batch, seq, d = 2, 8, 32
    x = jax.random.normal(k1, (batch, seq, d), dtype=jnp.float32)
    z = jax.random.normal(k2, (batch, seq, d), dtype=jnp.float32)
    # Parameter init: nn.Parameter(torch.ones(d)) -> ones, deterministic.
    weight = jnp.ones((d,), dtype=jnp.float32)

    # Gated path (z provided).
    out_gated = rmsnorm(x, weight, z=z, eps=1e-5)
    jax.block_until_ready(out_gated)
    ref_gated = _reference(x, weight, z=z, eps=1e-5)
    assert jnp.allclose(out_gated, ref_gated, atol=1e-5, rtol=1e-5)

    # Ungated path (z=None).
    out_plain = rmsnorm(x, weight, z=None, eps=1e-5)
    jax.block_until_ready(out_plain)
    ref_plain = _reference(x, weight, z=None, eps=1e-5)
    assert jnp.allclose(out_plain, ref_plain, atol=1e-5, rtol=1e-5)

    # bf16 I/O with a ragged row count (exercises pl.cdiv grid + adaptive tiling).
    d2 = 128
    xb = jax.random.normal(k3, (3, 5, d2), dtype=jnp.bfloat16)
    zb = jax.random.normal(k4, (3, 5, d2), dtype=jnp.bfloat16)
    wb = jnp.ones((d2,), dtype=jnp.float32)
    out_b = rmsnorm(xb, wb, z=zb, eps=1e-5)
    jax.block_until_ready(out_b)
    ref_b = _reference(xb, wb, z=zb, eps=1e-5)
    assert jnp.allclose(out_b.astype(jnp.float32), ref_b, atol=3e-2, rtol=3e-2)

    print("KERNEL_OK")
</pallas_src>

<mosaic_0001>
module attributes {stable_mosaic.version = 11 : i64} {
  func.func @_rmsnorm_gated_kernel(%arg0: i32, %arg1: memref<8x32xf32, #tpu.memory_space<vmem>>, %arg2: memref<8x32xf32, #tpu.memory_space<vmem>>, %arg3: memref<1x32xf32, #tpu.memory_space<vmem>>, %arg4: memref<8x32xf32, #tpu.memory_space<vmem>>) attributes {dimension_semantics = [#tpu.dimension_semantics<parallel>], iteration_bounds = array<i64: 2>, scalar_prefetch = 0 : i64, scratch_operands = 0 : i64, tpu.core_type = #tpu.core_type<tc>, window_params = [{transform_indices = @transform_0, window_bounds = array<i64: 8, 32>}, {transform_indices = @transform_1, window_bounds = array<i64: 8, 32>}, {pipeline_mode = #tpu.pipeline_mode<synchronous>, transform_indices = @transform_2, window_bounds = array<i64: 1, 32>}, {transform_indices = @transform_3, window_bounds = array<i64: 8, 32>}]} {
    %c0 = arith.constant 0 : index
    %c0_0 = arith.constant 0 : index
    %0 = vector.load %arg1[%c0, %c0_0] : memref<8x32xf32, #tpu.memory_space<vmem>>, vector<8x32xf32>
    %c0_1 = arith.constant 0 : index
    %c0_2 = arith.constant 0 : index
    %1 = vector.load %arg2[%c0_1, %c0_2] : memref<8x32xf32, #tpu.memory_space<vmem>>, vector<8x32xf32>
    %c0_3 = arith.constant 0 : index
    %c0_4 = arith.constant 0 : index
    %2 = vector.load %arg3[%c0_3, %c0_4] : memref<1x32xf32, #tpu.memory_space<vmem>>, vector<1x32xf32>
    %3 = arith.negf %1 : vector<8x32xf32>
    %4 = math.exp %3 : vector<8x32xf32>
    %cst = arith.constant 1.000000e+00 : f32
    %5 = vector.broadcast %cst : f32 to vector<8x32xf32>
    %6 = arith.addf %5, %4 : vector<8x32xf32>
    %7 = arith.divf %5, %6 : vector<8x32xf32>
    %8 = arith.mulf %1, %7 : vector<8x32xf32>
    %9 = arith.mulf %0, %8 : vector<8x32xf32>
    %10 = arith.mulf %9, %9 : vector<8x32xf32>
    %cst_5 = arith.constant dense<0.000000e+00> : vector<8xf32>
    %11 = vector.multi_reduction <add>, %10, %cst_5 [1] : vector<8x32xf32> to vector<8xf32>
    %12 = vector.shape_cast %11 : vector<8xf32> to vector<8x1xf32>
    %cst_6 = arith.constant 3.200000e+01 : f32
    %13 = vector.broadcast %cst_6 : f32 to vector<8x1xf32>
    %14 = arith.divf %12, %13 : vector<8x1xf32>
    %cst_7 = arith.constant 9.99999974E-6 : f32
    %15 = vector.broadcast %cst_7 : f32 to vector<8x1xf32>
    %16 = arith.addf %14, %15 : vector<8x1xf32>
    %17 = math.rsqrt %16 : vector<8x1xf32>
    %18 = vector.broadcast %17 : vector<8x1xf32> to vector<8x32xf32>
    %19 = arith.mulf %9, %18 : vector<8x32xf32>
    %20 = vector.broadcast %2 : vector<1x32xf32> to vector<8x32xf32>
    %21 = arith.mulf %19, %20 : vector<8x32xf32>
    %c0_8 = arith.constant 0 : index
    %c0_9 = arith.constant 0 : index
    %22 = vector.load %arg4[%c0_8, %c0_9] : memref<8x32xf32, #tpu.memory_space<vmem>>, vector<8x32xf32>
    tpu.vector_store %arg4[%c0_8, %c0_9], %21 {strides = array<i32>} : memref<8x32xf32, #tpu.memory_space<vmem>>, vector<8x32xf32>,
    return
  }
  func.func @transform_0(%arg0: i32) -> (i32, i32) {
    %c0_i32 = arith.constant 0 : i32
    %c0_i32_0 = arith.constant 0 : i32
    return %arg0, %c0_i32 : i32, i32
  }
  func.func @transform_1(%arg0: i32) -> (i32, i32) {
    %c0_i32 = arith.constant 0 : i32
    %c0_i32_0 = arith.constant 0 : i32
    return %arg0, %c0_i32 : i32, i32
  }
  func.func @transform_2(%arg0: i32) -> (i32, i32) {
    %c0_i32 = arith.constant 0 : i32
    %c0_i32_0 = arith.constant 0 : i32
    %c0_i32_1 = arith.constant 0 : i32
    return %c0_i32, %c0_i32_0 : i32, i32
  }
  func.func @transform_3(%arg0: i32) -> (i32, i32) {
    %c0_i32 = arith.constant 0 : i32
    %c0_i32_0 = arith.constant 0 : i32
    return %arg0, %c0_i32 : i32, i32
  }
}

</mosaic_0001>

<bundles_post_ra>
// kernel: tpu_custom_call.1
= control target key start
LH: loop header
LB: loop body
LE: loop exit
PB: predicated region body
PF: predicated region fallthrough
CT: control target
= control target key end

     0   :  { %8 = vsyncpa [#allocation3], 0  ;;  %s790_s0 = inlined_call_operand.hbm [shape: f32[16,32], index: 0, kind: input, shape index: {}]   ;;  %s791_s1 = inlined_call_operand.hbm [shape: f32[16,32], index: 1, kind: input, shape index: {}]   ;;  %s792_s2 = inlined_call_operand.vmem [shape: f32[1,32], index: 2, kind: input, shape index: {}]   ;;  %s793_s3 = inlined_call_operand.hbm [shape: f32[16,32], index: 3, kind: output, shape index: {}]  }
   0x1   :  { %10 = vsyncpa [#allocation3 + $0x1], 0 }
   0x2   :  { %11 = vsyncpa [#allocation6], 0 }
   0x3   :  { %13 = vsyncpa [#allocation6 + $0x1], 0 }
   0x4   :  { %14 = vsyncpa [#allocation4], 0 }
   0x5   :  { %16 = vsyncpa [#allocation4 + $0x1], 0  ;;  %s620_s12 = smov 0   ;;  %s622_s13 = smov 0  }
   0x6   :  { %s624_s14 = smov 0   ;;  %s626_s15 = smov 0  }
   0x7 LB: > { %s641_s16 = sadd.s32 4294967295, %s597_s15   ;;  %s390_s17 = sadd.s32 4294967294, %s597_s15   ;;  %s597_s15 = sphi %s626_s15, %s804_s15   ;;  %s593_s14 = sphi %s624_s14, %s803_s14   ;;  %s589_s13 = sphi %s622_s13, %s802_s13   ;;  %s585_s12 = sphi %s620_s12, %s801_s12  }
   0x8   : > { %s645_s18 = sadd.s32 1, %s597_s15   ;;  %s29_s19 = sadd.s32 1, %s593_s14 }
   0x9   : > { %s26_s20 = ssub.s32 %s597_s15, %s645_s18  ;;  %p36_p0 = scmp.ne.s32.totalorder %s593_s14, %s589_s13 }
   0xa   : > { %p27_p1 = scmp.eq.s32.totalorder %s26_s20, 0  ;;  %p37_p2 = scmp.eq.s32.totalorder %s597_s15, 0 }
   0xb   : > { %p42_p3 = scmp.ne.s32.totalorder %s589_s13, %s585_s12  ;;  %p43_p4 = scmp.eq.s32.totalorder %s641_s16, 0 }
   0xc   : > { %s657_s21 = scalar_select %p27_p1, %s593_s14, %s29_s19  }
   0xd   : > { %p659_p5 = por %p37_p2, %p36_p0  ;;  %p663_p6 = por %p43_p4, %p42_p3 }
   0xe   : > { %p113_p7 = scmp.eq.s32.totalorder %s641_s16, 1  ;;  %p119_p8 = scmp.eq.s32.totalorder %s390_s17, 1 }
   0xf   : > { %p423_p10 = scmp.lt.s32.totalorder %s597_s15, 2  ;;  %s679_s26 = sand.u32 1, %s593_s14  }
  0x10   : > { %p670_p11 = por %p113_p7, %p36_p0  ;;  %p674_p12 = por %p119_p8, %p42_p3 }
  0x11   : > { %s394_s27 = sshll.u32 %s597_s15, 3  ;;  %s393_s28 = sshll.u32 %s679_s26, 3 }
  0x12   : > { %s150_s4 = scalar_lea.hbm %s790_s0, %s394_s27  ;;  %s146_s6 = scalar_lea.vmem [#allocation2], %s393_s28 }
  0x13   : > { %s152_s5 = sshll.u32 %s150_s4, 4  ;;  %s154_s7 = sshll.u32 %s146_s6, 4  ;;  %s153_s5 = int_to_ptr.hbm [resolvable:$true] %s152_s5  ;;  %s155_s7 = int_to_ptr.vmem [resolvable:$true] %s154_s7 }
  0x14   : > { %p688_p13 = pnand %p423_p10, %p659_p5  ;;  %p397_p0 = scmp.ge.s32.totalorder %s597_s15, 1 }
  0x15   : > { %p178_p1 = scmp.lt.s32.totalorder %s597_s15, 3  ;;  %s143_s9 = scalar_lea.sflag [#allocation3], %s679_s26 }
  0x16   : > { %s467_s10 = sshra.s32 %s153_s5, 4  ;;  %p471_p3 = pneg %p688_p13  ;;  %s468_s10 = int_to_ptr.hbm [resolvable:$true] %s467_s10 }
  0x17   : > { %s469_s11 = scalar_lea.hbm %s468_s10, 8  ;;  %s474_s20 = scalar_lea.hbm %s790_s0, 16 }
  0x18   : > { %p470_p2 = scmp.ne.s32.totalorder %s468_s10, %s469_s11  ;;  %p475_p5 = scmp.lt.s32.totalorder %s468_s10, %s790_s0 }
  0x19   : > { %p476_p8 = scmp.lt.s32.totalorder %s474_s20, %s469_s11 }
  0x1a   : > { %p472_p4 = pnand %p471_p3, %p470_p2 }
  0x1b   : > { %p477_p10 = por %p476_p8, %p475_p5 }
  0x1c   : > { %p473_p7 = pneg %p472_p4 }
  0x1e   : > { %p478_p9 = pnand %p477_p10, %p473_p7 }
  0x20   : > { %481 = shalt.err (!%p478_p9)
}
  0x21   : > { %415 = dma.hbm_to_vmem [thread:$0]  (!%p688_p13), %s153_s5, 128, %s155_s7, %s143_s9  }
  0x22   : > { %p712_p2 = pnand %p397_p0, %p178_p1  ;;  %s169_s10 = scalar_lea.hbm %s791_s1, %s394_s27 }
  0x23   : > { %s171_s11 = sshll.u32 %s169_s10, 4  ;;  %s165_s17 = scalar_lea.vmem [#allocation5], %s393_s28  ;;  %s172_s11 = int_to_ptr.hbm [resolvable:$true] %s171_s11 }
  0x24   : > { %s173_s19 = sshll.u32 %s165_s17, 4  ;;  %s162_s20 = scalar_lea.sflag [#allocation6], %s679_s26  ;;  %s174_s19 = int_to_ptr.vmem [resolvable:$true] %s173_s19 }
  0x25   : > { %s497_s22 = sshra.s32 %s172_s11, 4  ;;  %s504_s9 = scalar_lea.hbm %s791_s1, 16  ;;  %s498_s22 = int_to_ptr.hbm [resolvable:$true] %s497_s22 }
  0x26   : > { %s499_s29 = scalar_lea.hbm %s498_s22, 8  ;;  %p505_p4 = scmp.lt.s32.totalorder %s498_s22, %s791_s1 }
  0x27   : > { %p500_p9 = scmp.ne.s32.totalorder %s498_s22, %s499_s29  ;;  %p506_p7 = scmp.lt.s32.totalorder %s504_s9, %s499_s29 }
  0x29   : > { %p502_p0 = pnand %p500_p9, %p471_p3  ;;  %p507_p5 = por %p506_p7, %p505_p4 }
  0x2b   : > { %p503_p1 = pneg %p502_p0 }
  0x2d   : > { %p508_p8 = pnand %p507_p5, %p503_p1 }
  0x2f   : > { %511 = shalt.err (!%p508_p8)
}
  0x30   : > { %418 = dma.hbm_to_vmem [thread:$0]  (!%p688_p13), %s172_s11, 128, %s174_s19, %s162_s20  }
  0x31   : > { %182 = sbr.rel (%p712_p2) target bundleno = 238 (0xee), region = 32  ;;  %s734_s26 = sand.u32 (!%p712_p2), 1, %s589_s13  }
  0x32   : > { %s737_s28 = sshll.u32 (!%p712_p2), %s734_s26, 3  ;;  %s185_s6 = scalar_lea.sflag (!%p712_p2), [#allocation3], %s734_s26 }
  0x33   : > { %s188_s10 = scalar_lea.vmem (!%p712_p2), [#allocation2], %s737_s28 }
  0x36   : > { %572 = dma.done.wait (%p663_p6), %s185_s6, 128  }
  0x37   : > { %574 = vsyncadd (%p663_p6), %s185_s6, 4294967168  ;;  %s195_s8 = scalar_lea.sflag [#allocation6], %s734_s26  ;;  %s198_s30 = scalar_lea.vmem [#allocation5], %s737_s28 }
  0x38   : > { %576 = dma.done.wait (%p663_p6), %s195_s8, 128  }
  0x39   : > { %578 = vsyncadd (%p663_p6), %s195_s8, 4294967168  ;;  %v228_v0 = vld [vmem:[%s198_s30] sm:$0xff]  ;;  %v227_v13 = vld [vmem:[%s188_s10] sm:$0xff]  ;;  %vm252_vm4 = vcmask 261120   ;;  %v599_v19 = vmov 32.0   ;;  %s403_s23 = sshll.u32 %s641_s16, 3 }
  0x3a   : > { %v401_v1 = vmul.f32 -1.442695, %v228_v0  ;;  %s292_s19 = scalar_lea.hbm %s793_s3, %s403_s23  ;;  %v458_v35 = vld [vmem:[%s792_s2] ss:$0 sm:$0xff]  ;;  %s226_s29 = scalar_lea.vmem [#allocation7], %s737_s28 }
  0x3b   : > { %s294_s5 = sshll.u32 %s226_s29, 4  ;;  %s296_s7 = sshll.u32 %s292_s19, 4  ;;  %s295_s5 = int_to_ptr.vmem [resolvable:$true] %s294_s5  ;;  %s297_s7 = int_to_ptr.hbm [resolvable:$true] %s296_s7 }
  0x3c   : > { %459 = vpow2.f32 %v401_v1  ;;  %s282_s16 = scalar_lea.sflag [#allocation4], %s734_s26  ;;  %s541_s9 = sshra.s32 %s297_s7, 4  ;;  %s542_s9 = int_to_ptr.hbm [resolvable:$true] %s541_s9 }
  0x3d   : > { %s543_s4 = scalar_lea.hbm %s542_s9, 8  ;;  %s547_s28 = scalar_lea.hbm %s793_s3, 16 }
  0x3e   : > { %p544_p6 = scmp.ne.s32.totalorder %s542_s9, %s543_s4  ;;  %p548_p10 = scmp.lt.s32.totalorder %s542_s9, %s793_s3 }
  0x3f   : > { %p549_p2 = scmp.lt.s32.totalorder %s547_s28, %s543_s4 }
  0x40   : > { %p545_p13 = pnand %p544_p6, %p670_p11 }
  0x41   : > { %p550_p9 = por %p549_p2, %p548_p10 }
  0x42   : > { %v460_v2 = vpop.eup %459  ;;  %p546_p3 = pneg %p545_p13 }
  0x43   : > { %v233_v3 = vadd.f32 1.0, %v460_v2 }
  0x44   : > { %p551_p0 = pnand %p550_p9, %p546_p3 }
  0x45   : > { %461 = vrcp.f32 %v233_v3  ;;  %v245_v6 = vand.u32 2147483648, %v233_v3  ;;  %vm239_vm0 = vweird.f32 %v233_v3  ;;  %v243_v8 = vand.u32 2147483647, %v233_v3 }
  0x46   : > { %463 = vrcp.f32 %v599_v19 }
  0x47   : > { %v246_v10 = vor.u32 1.1754944e-38, %v245_v6  ;;  %vm244_vm3 = vcmp.eq.f32.partialorder %v243_v8, 8.507059e+37 }
  0x4b   : > { %v462_v4 = vpop.eup %461 }
  0x4c   : > { %v235_v5 = vmul.f32 %v462_v4, %v233_v3  ;;  %vm240_vm1 = vweird.f32 %v462_v4  ;;  %v464_v20 = vpop.eup %463 }
  0x4d   : > { %vm241_vm2 = vmor %vm239_vm0, %vm240_vm1  ;;  %v257_v21 = vmul.f32 32.0, %v464_v20  ;;  %vm261_vm5 = vweird.f32 %v464_v20 }
  0x4e   : > { %v236_v7 = vsub.f32 1.0, %v235_v5 }
  0x4f   : > { %v258_v22 = vsub.f32 1.0, %v257_v21 }
  0x50   : > { %v237_v9 = vmul.f32 %v462_v4, %v236_v7 }
  0x51   : > { %v259_v23 = vmul.f32 %v464_v20, %v258_v22 }
  0x52   : > { %v238_v11 = vadd.f32 %v462_v4, %v237_v9 }
  0x53   : > { %v260_v24 = vadd.f32 %v464_v20, %v259_v23 }
  0x54   : > { %v242_v12 = vsel %vm241_vm2, %v462_v4, %v238_v11 }
  0x55   : > { %v247_v14 = vsel %vm244_vm3, %v246_v10, %v242_v12  ;;  %v262_v25 = vsel %vm261_vm5, %v464_v20, %v260_v24 }
  0x56   : > { %v249_v15 = vmul.f32 %v247_v14, %v228_v0 }
  0x58   : > { %v250_v16 = vmul.f32 %v249_v15, %v227_v13 }
  0x5a   : > { %v251_v17 = vmul.f32 %v250_v16, %v250_v16 }
  0x5c   : > { %v253_v18 = vsel %vm252_vm4, %v251_v17, 0.0 }
  0x5d   : > { %254 = vadd.xlane.f32.xlu0 %v253_v18 }
  0xd0   : > { %v255_v26 = vpop.xlane.xlu0 %254 }
  0xd1   : > { %v263_v27 = vmul.f32 %v262_v25, %v255_v26 }
  0xd3   : > { %v264_v28 = vadd.f32 1e-05, %v263_v27 }
  0xd5   : > { %465 = vrsqrt.f32 %v264_v28  ;;  %vm271_vm7 = vweird.f32 %v264_v28 }
  0xdb   : > { %v466_v29 = vpop.eup %465 }
  0xdc   : > { %v266_v30 = vmul.f32 %v466_v29, %v264_v28  ;;  %vm272_vm6 = vweird.f32 %v466_v29 }
  0xdd   : > { %vm273_vm8 = vmor %vm271_vm7, %vm272_vm6 }
  0xde   : > { %v267_v31 = vmul.f32 %v466_v29, %v266_v30 }
  0xe0   : > { %v268_v32 = vmul.f32 0.5, %v267_v31 }
  0xe2   : > { %v269_v33 = vsub.f32 1.5, %v268_v32 }
  0xe4   : > { %v270_v34 = vmul.f32 %v466_v29, %v269_v33 }
  0xe6   : > { %v274_v36 = vsel %vm273_vm8, %v466_v29, %v270_v34 }
  0xe7   : > { %v275_v37 = vmul.f32 %v274_v36, %v250_v16 }
  0xe9   : > { %v279_v38 = vmul.f32 %v458_v35, %v275_v37 }
  0xeb   : > { %280 = vst.msk [vmem:[%s226_s29] sm:$0xff] %vm252_vm4, %v279_v38 }
  0xec   : > { %554 = shalt.err (!%p551_p0)
}
  0xed   : > { %410 = dma.vmem_to_hbm [thread:$0]  (%p670_p11), %s295_s5, 128, %s297_s7, %s282_s16  }
  0xee PF: > { %s308_s26 = sand.u32 1, %s585_s12   ;;  %p800_p1 = scmp.ge.s32.totalorder %s597_s15, 2 }
  0xef   : > { %s309_s30 = scalar_lea.sflag [#allocation4], %s308_s26 }
  0xf0   : > { %p420_p4 = pnand %p800_p1, %p674_p12 }
  0xf2   : > { %p421_p7 = pneg %p420_p4 }
  0xf4   : > { %580 = dma.done.wait (%p421_p7), %s309_s30, 128  }
  0xf5   : > { %582 = vsyncadd (%p421_p7), %s309_s30, 4294967168  ;;  %p19_p5 = scmp.ge.s32.totalorder %s645_s18, 4   ;;  %s801_s12 = smov %s589_s13 }
  0xf6   : > { %s802_s13 = smov %s593_s14  ;;  %s803_s14 = smov %s657_s21 }
  0xf7   : > { %s804_s15 = smov %s645_s18  ;;  %21 = sbr.rel (!%p19_p5) target bundleno = 7 (0x7), region = 90 }
  0xfc   :  { %315 = vsyncpa [#allocation3], 1 }
  0xfd   :  { %317 = vsyncpa [#allocation3 + $0x1], 1 }
  0xfe   :  { %318 = vsyncpa [#allocation6], 1 }
  0xff   :  { %320 = vsyncpa [#allocation6 + $0x1], 1 }
 0x100   :  { %321 = vsyncpa [#allocation4], 1 }
 0x101   :  { %323 = vsyncpa [#allocation4 + $0x1], 1 }

</bundles_post_ra>
